<compile_context>
chip_gen: v5e
topology: v5e:2x2
jax: 0.10.0
libtpu: 0.0.40
codegen_flags: <defaults>
</compile_context>

<pallas_src>
import jax
import jax.numpy as jnp
from jax.experimental import pallas as pl
from jax.experimental.pallas import tpu as pltpu


def _make_resblock_kernel(cexp, cexp_chunk):
    """Kernel factory; cexp / cexp_chunk are static Python ints."""
    n_chunks = cexp // cexp_chunk

    def kernel(patches_ref, xres_ref, w1_ref, b1_ref, w2_ref, b2_ref, o_ref):
        # patches_ref: (9*Cin, tile)   im2col taps, (batch*spatial) in lanes
        # xres_ref   : (Cin,  tile)    residual input (f32)
        # w1_ref     : (Cexp, 9*Cin)   3x3 conv weight (BN scale folded in)
        # b1_ref     : (Cexp, 1)       3x3 conv bias   (BN shift folded in, f32)
        # w2_ref     : (Cin,  Cexp)    1x1 conv weight
        # b2_ref     : (Cin,  1)       1x1 conv bias (f32)
        # o_ref      : (Cin,  tile)    output, lanes fully dense
        patches = patches_ref[...]
        # Start the accumulator at residual + conv2 bias (both f32).
        acc = xres_ref[...].astype(jnp.float32) + b2_ref[...]
        # Chunk the expansion dim so the (chunk, tile) intermediate stays
        # register/VMEM friendly at large Cexp (single chunk at small sizes).
        for i in range(n_chunks):
            c0 = i * cexp_chunk
            h = jnp.dot(w1_ref[c0:c0 + cexp_chunk, :], patches,
                        preferred_element_type=jnp.float32)
            h = jnp.maximum(h + b1_ref[c0:c0 + cexp_chunk, :], 0.0)
            acc = acc + jnp.dot(w2_ref[:, c0:c0 + cexp_chunk],
                                h.astype(w2_ref.dtype),
                                preferred_element_type=jnp.float32)
        o_ref[...] = jnp.maximum(acc, 0.0).astype(o_ref.dtype)

    return kernel


def _pick_lane_tile(lanes_padded, cin, cexp, in_itemsize,
                    budget_bytes=40 * (1 << 20)):
    """Largest 128-multiple tile dividing lanes_padded that fits the
    double-buffered VMEM budget, preferring >=2 grid steps (megacore)."""
    cands = [k * 128 for k in range(1, lanes_padded // 128 + 1)
             if lanes_padded % (k * 128) == 0]
    weight_bytes = (cexp * (9 * cin + 1) + cin * (cexp + 1)) * 4

    def fits(tile):
        io = (9 * cin + cin) * tile * in_itemsize + cin * tile * 4  # in + out
        return 2 * io + 2 * weight_bytes <= budget_bytes

    fitting = [t for t in cands if fits(t)]
    best = max(fitting) if fitting else 128
    # Keep at least 2 "parallel" grid steps when possible (v7x: 2 TensorCores).
    if best == lanes_padded and lanes_padded >= 256:
        halves = [t for t in fitting if t <= lanes_padded // 2]
        if halves:
            best = max(halves)
    return best


def resblock_pallas(x_nchw, w1_oihw, b1, w2_oi, b2,
                    gamma, beta, running_mean, running_var, eps=1e-5,
                    compute_dtype=jnp.float32):
    """Pallas ResBlock. x_nchw: (N, Cin, H, W) f32 -> (N, Cin, H, W)."""
    N, Cin, H, W = x_nchw.shape
    Cexp = w1_oihw.shape[0]
    HW = H * W
    L = N * HW

    # ---- parameter glue: fold eval-mode BN into conv1 ----------------------
    scale = gamma / jnp.sqrt(running_var + eps)               # (Cexp,)
    w1_folded = w1_oihw * scale[:, None, None, None]          # (Cexp,Cin,3,3)
    b1_folded = (b1 - running_mean) * scale + beta            # (Cexp,)
    w1_flat = w1_folded.reshape(Cexp, Cin * 9)                # (ci,dy,dx) order

    # ---- data glue: im2col, channel-major, batch folded into lanes ---------
    x_pad = jnp.pad(x_nchw, ((0, 0), (0, 0), (1, 1), (1, 1)))
    taps = [x_pad[:, :, dy:dy + H, dx:dx + W]
            for dy in range(3) for dx in range(3)]            # 9 x (N,Cin,H,W)
    patches = jnp.stack(taps, axis=2)                         # (N,Cin,9,H,W)
    # row = ci*9 + (dy*3+dx)  (matches w1_flat), col = n*HW + hw
    patches = patches.transpose(1, 2, 0, 3, 4).reshape(Cin * 9, L)
    x_res = x_nchw.transpose(1, 0, 2, 3).reshape(Cin, L)      # residual (f32)

    # ---- pad lane axis to a multiple of 128 (unmasked full-width stores) ---
    Lp = ((L + 127) // 128) * 128
    if Lp != L:
        patches = jnp.pad(patches, ((0, 0), (0, Lp - L)))
        x_res = jnp.pad(x_res, ((0, 0), (0, Lp - L)))

    # ---- operand dtype (bf16 option halves HBM bytes + native MXU passes) --
    patches = patches.astype(compute_dtype)
    w1_flat = w1_flat.astype(compute_dtype)
    w2_cast = w2_oi.astype(compute_dtype)
    in_itemsize = jnp.dtype(compute_dtype).itemsize

    # ---- tile selection & Cexp chunking -------------------------------------
    tile = _pick_lane_tile(Lp, Cin, Cexp, in_itemsize)
    n_tiles = Lp // tile

    h_bytes_budget = 192 * 1024            # cap on live (chunk, tile) f32 block
    if Cexp * tile * 4 <= h_bytes_budget:
        cexp_chunk = Cexp
    else:
        divs = [d for d in range(1, Cexp + 1) if Cexp % d == 0]
        ok = [d for d in divs if d * tile * 4 <= h_bytes_budget]
        cexp_chunk = max(ok) if ok else min(divs)

    kernel = _make_resblock_kernel(Cexp, cexp_chunk)

    # ---- VMEM limit: raise above v5e's 16 MiB default, stay under v7x's 64 --
    vmem_limit = 48 * (1 << 20)

    out_flat = pl.pallas_call(
        kernel,
        out_shape=jax.ShapeDtypeStruct((Cin, Lp), x_nchw.dtype),
        grid_spec=pltpu.PrefetchScalarGridSpec(
            num_scalar_prefetch=0,
            grid=(n_tiles,),
            in_specs=[
                pl.BlockSpec((Cin * 9, tile), lambda t: (0, t)),
                pl.BlockSpec((Cin, tile), lambda t: (0, t)),
                pl.BlockSpec((Cexp, Cin * 9), lambda t: (0, 0)),
                pl.BlockSpec((Cexp, 1), lambda t: (0, 0)),
                pl.BlockSpec((Cin, Cexp), lambda t: (0, 0)),
                pl.BlockSpec((Cin, 1), lambda t: (0, 0)),
            ],
            out_specs=pl.BlockSpec((Cin, tile), lambda t: (0, t)),
        ),
        compiler_params=pltpu.CompilerParams(
            dimension_semantics=("parallel",),
            vmem_limit_bytes=vmem_limit),
    )(patches, x_res, w1_flat,
      b1_folded.reshape(Cexp, 1), w2_cast, b2.reshape(Cin, 1))

    # Slice off lane padding, restore NCHW.
    out = out_flat[:, :L].reshape(Cin, N, H, W).transpose(1, 0, 2, 3)
    return out


def resblock_reference(x, w1_oihw, b1, w2_oi, b2,
                       gamma, beta, running_mean, running_var, eps=1e-5):
    """Plain-JAX reference (eval-mode BN), NCHW in/out, PyTorch weight layouts."""
    h = jax.lax.conv_general_dilated(
        x, w1_oihw, window_strides=(1, 1), padding="SAME",
        dimension_numbers=("NCHW", "OIHW", "NCHW"))
    h = h + b1[None, :, None, None]
    h = (h - running_mean[None, :, None, None]) / jnp.sqrt(
        running_var[None, :, None, None] + eps)
    h = h * gamma[None, :, None, None] + beta[None, :, None, None]
    h = jnp.maximum(h, 0.0)
    y = jnp.einsum("nchw,oc->nohw", h, w2_oi) + b2[None, :, None, None]
    return jnp.maximum(y + x, 0.0)


if __name__ == "__main__":
    key = jax.random.PRNGKey(0)
    N, Cin, H, W = 2, 4, 16, 16
    Cexp = 8

    keys = jax.random.split(key, 7)
    x = jax.random.normal(keys[0], (N, Cin, H, W), dtype=jnp.float32)
    # Conv1: PyTorch layout (Cexp, Cin, 3, 3)
    w1 = 0.1 * jax.random.normal(keys[1], (Cexp, Cin, 3, 3), dtype=jnp.float32)
    b1 = 0.1 * jax.random.normal(keys[2], (Cexp,), dtype=jnp.float32)
    # Conv2 (1x1): weight (Cin, Cexp)
    w2 = 0.1 * jax.random.normal(keys[3], (Cin, Cexp), dtype=jnp.float32)
    b2 = 0.1 * jax.random.normal(keys[4], (Cin,), dtype=jnp.float32)
    # BatchNorm eval-mode params with non-trivial running stats.
    gamma = 1.0 + 0.1 * jax.random.normal(keys[5], (Cexp,), dtype=jnp.float32)
    beta = 0.1 * jax.random.normal(keys[6], (Cexp,), dtype=jnp.float32)
    running_mean = 0.05 * jnp.arange(Cexp, dtype=jnp.float32)
    running_var = 1.0 + 0.1 * jnp.arange(Cexp, dtype=jnp.float32)

    out = jax.block_until_ready(
        resblock_pallas(x, w1, b1, w2, b2, gamma, beta,
                        running_mean, running_var))
    ref = jax.block_until_ready(
        resblock_reference(x, w1, b1, w2, b2, gamma, beta,
                           running_mean, running_var))

    assert out.shape == (N, Cin, H, W)
    assert jnp.allclose(out, ref, atol=1e-4, rtol=1e-4), "mismatch vs reference"
    print("KERNEL_OK")
</pallas_src>

<mosaic_0001>
module attributes {stable_mosaic.version = 11 : i64} {
  func.func @kernel(%arg0: i32, %arg1: memref<36x256xf32, #tpu.memory_space<vmem>>, %arg2: memref<4x256xf32, #tpu.memory_space<vmem>>, %arg3: memref<8x36xf32, #tpu.memory_space<vmem>>, %arg4: memref<8x1xf32, #tpu.memory_space<vmem>>, %arg5: memref<4x8xf32, #tpu.memory_space<vmem>>, %arg6: memref<4x1xf32, #tpu.memory_space<vmem>>, %arg7: memref<4x256xf32, #tpu.memory_space<vmem>>) attributes {dimension_semantics = [#tpu.dimension_semantics<parallel>], iteration_bounds = array<i64: 2>, scalar_prefetch = 0 : i64, scratch_operands = 0 : i64, tpu.core_type = #tpu.core_type<tc>, window_params = [{transform_indices = @transform_0, window_bounds = array<i64: 36, 256>}, {transform_indices = @transform_1, window_bounds = array<i64: 4, 256>}, {pipeline_mode = #tpu.pipeline_mode<synchronous>, transform_indices = @transform_2, window_bounds = array<i64: 8, 36>}, {pipeline_mode = #tpu.pipeline_mode<synchronous>, transform_indices = @transform_3, window_bounds = array<i64: 8, 1>}, {pipeline_mode = #tpu.pipeline_mode<synchronous>, transform_indices = @transform_4, window_bounds = array<i64: 4, 8>}, {pipeline_mode = #tpu.pipeline_mode<synchronous>, transform_indices = @transform_5, window_bounds = array<i64: 4, 1>}, {transform_indices = @transform_6, window_bounds = array<i64: 4, 256>}]} {
    %c0 = arith.constant 0 : index
    %c0_0 = arith.constant 0 : index
    %0 = vector.load %arg1[%c0, %c0_0] : memref<36x256xf32, #tpu.memory_space<vmem>>, vector<36x256xf32>
    %c0_1 = arith.constant 0 : index
    %c0_2 = arith.constant 0 : index
    %1 = vector.load %arg2[%c0_1, %c0_2] : memref<4x256xf32, #tpu.memory_space<vmem>>, vector<4x256xf32>
    %c0_3 = arith.constant 0 : index
    %c0_4 = arith.constant 0 : index
    %2 = vector.load %arg6[%c0_3, %c0_4] : memref<4x1xf32, #tpu.memory_space<vmem>>, vector<4x1xf32>
    %3 = vector.broadcast %2 : vector<4x1xf32> to vector<4x256xf32>
    %4 = arith.addf %1, %3 : vector<4x256xf32>
    %c0_5 = arith.constant 0 : index
    %c0_6 = arith.constant 0 : index
    %5 = vector.load %arg3[%c0_5, %c0_6] : memref<8x36xf32, #tpu.memory_space<vmem>>, vector<8x36xf32>
    %cst = arith.constant dense<0.000000e+00> : vector<8x256xf32>
    %6 = tpu.matmul %5, %0, %cst {dimension_numbers = #tpu.dot_dimension_numbers<[1], [0], [0], [1], [0, 0, 1, 1], [], []>} : vector<8x36xf32>, vector<36x256xf32>, vector<8x256xf32> -> vector<8x256xf32>
    %c0_7 = arith.constant 0 : index
    %c0_8 = arith.constant 0 : index
    %7 = vector.load %arg4[%c0_7, %c0_8] : memref<8x1xf32, #tpu.memory_space<vmem>>, vector<8x1xf32>
    %8 = vector.broadcast %7 : vector<8x1xf32> to vector<8x256xf32>
    %9 = arith.addf %6, %8 : vector<8x256xf32>
    %cst_9 = arith.constant 0.000000e+00 : f32
    %10 = vector.broadcast %cst_9 : f32 to vector<8x256xf32>
    %11 = arith.maximumf %9, %10 : vector<8x256xf32>
    %c0_10 = arith.constant 0 : index
    %c0_11 = arith.constant 0 : index
    %12 = vector.load %arg5[%c0_10, %c0_11] : memref<4x8xf32, #tpu.memory_space<vmem>>, vector<4x8xf32>
    %cst_12 = arith.constant dense<0.000000e+00> : vector<4x256xf32>
    %13 = tpu.matmul %12, %11, %cst_12 {dimension_numbers = #tpu.dot_dimension_numbers<[1], [0], [0], [1], [0, 0, 1, 1], [], []>} : vector<4x8xf32>, vector<8x256xf32>, vector<4x256xf32> -> vector<4x256xf32>
    %14 = arith.addf %4, %13 : vector<4x256xf32>
    %cst_13 = arith.constant 0.000000e+00 : f32
    %15 = vector.broadcast %cst_13 : f32 to vector<4x256xf32>
    %16 = arith.maximumf %14, %15 : vector<4x256xf32>
    %c0_14 = arith.constant 0 : index
    %c0_15 = arith.constant 0 : index
    %17 = vector.load %arg7[%c0_14, %c0_15] : memref<4x256xf32, #tpu.memory_space<vmem>>, vector<4x256xf32>
    tpu.vector_store %arg7[%c0_14, %c0_15], %16 {strides = array<i32>} : memref<4x256xf32, #tpu.memory_space<vmem>>, vector<4x256xf32>,
    return
  }
  func.func @transform_0(%arg0: i32) -> (i32, i32) {
    %c0_i32 = arith.constant 0 : i32
    %c0_i32_0 = arith.constant 0 : i32
    return %c0_i32, %arg0 : i32, i32
  }
  func.func @transform_1(%arg0: i32) -> (i32, i32) {
    %c0_i32 = arith.constant 0 : i32
    %c0_i32_0 = arith.constant 0 : i32
    return %c0_i32, %arg0 : i32, i32
  }
  func.func @transform_2(%arg0: i32) -> (i32, i32) {
    %c0_i32 = arith.constant 0 : i32
    %c0_i32_0 = arith.constant 0 : i32
    %c0_i32_1 = arith.constant 0 : i32
    return %c0_i32, %c0_i32_0 : i32, i32
  }
  func.func @transform_3(%arg0: i32) -> (i32, i32) {
    %c0_i32 = arith.constant 0 : i32
    %c0_i32_0 = arith.constant 0 : i32
    %c0_i32_1 = arith.constant 0 : i32
    return %c0_i32, %c0_i32_0 : i32, i32
  }
  func.func @transform_4(%arg0: i32) -> (i32, i32) {
    %c0_i32 = arith.constant 0 : i32
    %c0_i32_0 = arith.constant 0 : i32
    %c0_i32_1 = arith.constant 0 : i32
    return %c0_i32, %c0_i32_0 : i32, i32
  }
  func.func @transform_5(%arg0: i32) -> (i32, i32) {
    %c0_i32 = arith.constant 0 : i32
    %c0_i32_0 = arith.constant 0 : i32
    %c0_i32_1 = arith.constant 0 : i32
    return %c0_i32, %c0_i32_0 : i32, i32
  }
  func.func @transform_6(%arg0: i32) -> (i32, i32) {
    %c0_i32 = arith.constant 0 : i32
    %c0_i32_0 = arith.constant 0 : i32
    return %c0_i32, %arg0 : i32, i32
  }
}

</mosaic_0001>

<bundles_post_ra>
// kernel: tpu_custom_call.1
= control target key start
LH: loop header
LB: loop body
LE: loop exit
PB: predicated region body
PF: predicated region fallthrough
CT: control target
= control target key end

     0   :  { %s993_s0 = inlined_call_operand.hbm [shape: f32[36,512], index: 0, kind: input, shape index: {}]   ;;  %s994_s1 = inlined_call_operand.hbm [shape: f32[4,512], index: 1, kind: input, shape index: {}]   ;;  %s995_s2 = inlined_call_operand.vmem [shape: f32[8,36], index: 2, kind: input, shape index: {}]   ;;  %s996_s3 = inlined_call_operand.vmem [shape: f32[8,1], index: 3, kind: input, shape index: {}]   ;;  %s997_s4 = inlined_call_operand.vmem [shape: f32[4,8], index: 4, kind: input, shape index: {}]   ;;  %s998_s5 = inlined_call_operand.vmem [shape: f32[4,1], index: 5, kind: input, shape index: {}]   ;;  %s999_s6 = inlined_call_operand.hbm [shape: f32[4,512], index: 6, kind: output, shape index: {}]  }
   0x1   :  { %1003 = sst [smem:[#allocation14_spill]] %s993_s0 }
   0x2   :  { %11 = vsyncpa [#allocation3], 0 }
   0x3   :  { %13 = vsyncpa [#allocation3 + $0x1], 0 }
   0x4   :  { %14 = vsyncpa [#allocation6], 0 }
   0x5   :  { %16 = vsyncpa [#allocation6 + $0x1], 0 }
   0x6   :  { %17 = vsyncpa [#allocation4], 0 }
   0x7   :  { %19 = vsyncpa [#allocation4 + $0x1], 0  ;;  %s816_s21 = smov 0   ;;  %s818_s22 = smov 0  }
   0x8   :  { %s820_s23 = smov 0   ;;  %s822_s24 = smov 0  }
   0x9 LB: > { %1004 = sst [smem:[#allocation11_spill]] %s770_s23  ;;  %s837_s25 = sadd.s32 4294967295, %s774_s24   ;;  %s774_s24 = sphi %s822_s24, %s1013_s24   ;;  %s770_s23 = sphi %s820_s23, %s1015_s23   ;;  %s766_s22 = sphi %s818_s22, %s1017_s22   ;;  %s762_s21 = sphi %s816_s21, %s1016_s21  }
   0xa   : > { %s560_s26 = sadd.s32 4294967294, %s774_s24   ;;  %s841_s27 = sadd.s32 1, %s774_s24  }
   0xb   : > { %1005 = sst [smem:[#allocation12_spill]] %s841_s27  ;;  %s32_s28 = sadd.s32 1, %s770_s23 }
   0xc   : > { %s29_s29 = ssub.s32 %s774_s24, %s841_s27  ;;  %p39_p0 = scmp.ne.s32.totalorder %s770_s23, %s766_s22 }
   0xd   : > { %p30_p1 = scmp.eq.s32.totalorder %s29_s29, 0  ;;  %p40_p2 = scmp.eq.s32.totalorder %s774_s24, 0 }
   0xe   : > { %p45_p3 = scmp.ne.s32.totalorder %s766_s22, %s762_s21  ;;  %p46_p4 = scmp.eq.s32.totalorder %s837_s25, 0 }
   0xf   : > { %s853_s30 = scalar_select %p30_p1, %s770_s23, %s32_s28  }
  0x10   : > { %p41_p5 = por %p40_p2, %p39_p0  ;;  %p855_p6 = por %p46_p4, %p45_p3 }
  0x11   : > { %1006 = sst [smem:[#allocation13_spill]] %s853_s30  ;;  %p179_p7 = scmp.eq.s32.totalorder %s837_s25, 1 }
  0x12   : > { %p185_p8 = scmp.eq.s32.totalorder %s560_s26, 1  ;;  %p562_p9 = scmp.ge.s32.totalorder %s774_s24, 2 }
  0x13   : > { %p604_p10 = scmp.lt.s32.totalorder %s774_s24, 2  ;;  %p862_p11 = por %p179_p7, %p39_p0 }
  0x14   : > { %p866_p12 = por %p185_p8, %p45_p3  ;;  %s871_s10 = sand.u32 1, %s770_s23  }
  0x15   : > { %s582_s11 = sshll.u32 %s774_s24, 4  ;;  %s585_s12 = smul.u32 80, %s871_s10 }
  0x16   : > { %s1010_s0 = sld [smem:[#allocation14_spill]]  ;;  %p878_p13 = pnand %p604_p10, %p41_p5 }
  0x17   : > { %s221_s18 = scalar_lea.vmem [#allocation2], %s585_s12  ;;  %p568_p0 = scmp.ge.s32.totalorder %s774_s24, 1 }
  0x18   : > { %s229_s19 = sshll.u32 %s221_s18, 4  ;;  %s218_s20 = scalar_lea.sflag [#allocation3], %s871_s10  ;;  %s230_s19 = int_to_ptr.vmem [resolvable:$true] %s229_s19 }
  0x19   : > { %p648_p2 = pneg %p878_p13 }
  0x1c   : > { %s226_s15 = scalar_lea.hbm %s1010_s0, %s582_s11  ;;  %s651_s13 = scalar_lea.hbm %s1010_s0, 160 }
  0x1d   : > { %s227_s17 = sshll.u32 %s226_s15, 4  ;;  %s228_s17 = int_to_ptr.hbm [resolvable:$true] %s227_s17 }
  0x1e   : > { %s644_s26 = sshra.s32 %s228_s17, 4  ;;  %s645_s26 = int_to_ptr.hbm [resolvable:$true] %s644_s26 }
  0x1f   : > { %s646_s28 = scalar_lea.hbm %s645_s26, 80  ;;  %p652_p5 = scmp.lt.s32.totalorder %s645_s26, %s1010_s0 }
  0x20   : > { %p647_p1 = scmp.ne.s32.totalorder %s645_s26, %s646_s28  ;;  %p653_p7 = scmp.lt.s32.totalorder %s651_s13, %s646_s28 }
  0x22   : > { %p649_p3 = pnand %p648_p2, %p647_p1  ;;  %p654_p8 = por %p653_p7, %p652_p5 }
  0x24   : > { %p650_p4 = pneg %p649_p3 }
  0x26   : > { %p655_p10 = pnand %p654_p8, %p650_p4 }
  0x28   : > { %658 = shalt.err (!%p655_p10)
}
  0x29   : > { %s776_s15 = smov 512   ;;  %s777_s18 = smov 256  }
  0x2a   : > { %s778_s30 = smov 16   ;;  %p257_p1 = scmp.lt.s32.totalorder %s774_s24, 3 }
  0x2b   : > { %596 = dma.hbm_to_vmem [thread:$0]  (!%p878_p13), %s228_s17, 1280, %s230_s19, %s218_s20, %s776_s15, %s777_s18, %s778_s30  }
  0x2c   : > { %s565_s29 = sshll.u32 %s871_s10, 3  ;;  %s583_s11 = sshll.u32 %s774_s24, 3 }
  0x2d   : > { %p902_p3 = pnand %p568_p0, %p257_p1  ;;  %s248_s14 = scalar_lea.hbm %s994_s1, %s583_s11 }
  0x2e   : > { %s243_s12 = scalar_lea.vmem [#allocation5], %s565_s29  ;;  %s250_s23 = sshll.u32 %s248_s14, 4  ;;  %s251_s23 = int_to_ptr.hbm [resolvable:$true] %s250_s23 }
  0x2f   : > { %s252_s0 = sshll.u32 %s243_s12, 4  ;;  %s240_s27 = scalar_lea.sflag [#allocation6], %s871_s10  ;;  %s253_s0 = int_to_ptr.vmem [resolvable:$true] %s252_s0 }
  0x30   : > { %s674_s30 = sshra.s32 %s251_s23, 4  ;;  %s681_s15 = scalar_lea.hbm %s994_s1, 16  ;;  %s675_s30 = int_to_ptr.hbm [resolvable:$true] %s674_s30 }
  0x31   : > { %s676_s17 = scalar_lea.hbm %s675_s30, 8  ;;  %p682_p7 = scmp.lt.s32.totalorder %s675_s30, %s994_s1 }
  0x32   : > { %p677_p4 = scmp.ne.s32.totalorder %s675_s30, %s676_s17  ;;  %p683_p8 = scmp.lt.s32.totalorder %s681_s15, %s676_s17 }
  0x34   : > { %p679_p0 = pnand %p677_p4, %p648_p2  ;;  %p684_p10 = por %p683_p8, %p682_p7 }
  0x36   : > { %p680_p5 = pneg %p679_p0 }
  0x38   : > { %p685_p1 = pnand %p684_p10, %p680_p5 }
  0x3a   : > { %688 = shalt.err (!%p685_p1)
}
  0x3b   : > { %599 = dma.hbm_to_vmem [thread:$0]  (!%p878_p13), %s251_s23, 128, %s253_s0, %s240_s27  }
  0x3c   : > { %261 = sbr.rel (%p902_p3) target bundleno = 353 (0x161), region = 44  ;;  %s924_s10 = sand.u32 (!%p902_p3), 1, %s766_s22  }
  0x3d   : > { %s586_s29 = smul.u32 (!%p902_p3), 80, %s924_s10  ;;  %s264_s28 = scalar_lea.sflag (!%p902_p3), [#allocation3], %s924_s10 }
  0x3f   : > { %s267_s13 = scalar_lea.vmem (!%p902_p3), [#allocation2], %s586_s29 }
  0x41   : > { %749 = dma.done.wait (%p855_p6), %s264_s28, 1280  }
  0x42   : > { %751 = vsyncadd (%p855_p6), %s264_s28, 4294966016  ;;  %s569_s0 = sshll.u32 %s924_s10, 3  ;;  %s274_s23 = scalar_lea.sflag [#allocation6], %s924_s10 }
  0x43   : > { %s936_s27 = scalar_lea.vmem [#allocation5], %s569_s0 }
  0x44   : > { %753 = dma.done.wait (%p855_p6), %s274_s23, 128  }
  0x45   : > { %755 = vsyncadd (%p855_p6), %s274_s23, 4294967168  ;;  %v779_v0 = vmov 0   ;;  %vm348_vm0 = vcmask 1043456   ;;  %v323_v1 = vld [vmem:[%s267_s13 + $0x40] sm:$0xf]  ;;  %v321_v3 = vld [vmem:[%s267_s13 + $0x30] sm:$0xff] }
  0x46   : > { %643 = vset.pattern.permute.xlu0 %v779_v0  ;;  %v324_v2 = vld [vmem:[%s267_s13 + $0x48] sm:$0xf]  ;;  %571 = vmatpush.msk.msra.mxu0 %vm348_vm0, %v323_v1  ;;  %v322_v4 = vld [vmem:[%s267_s13 + $0x38] sm:$0xff]  ;;  %v319_v5 = vld [vmem:[%s267_s13 + $0x20] sm:$0xff]  ;;  %vm344_vm1 = vcmask 293888   ;;  %vm398_vm2 = vcmask 64512  }
  0x47   : > { %573 = vmatpush.msk.msra.mxu1 %vm348_vm0, %v324_v2  ;;  %v320_v6 = vld [vmem:[%s267_s13 + $0x28] sm:$0xff]  ;;  %v338_v7 = vld [vmem:[%s996_s3] sm:$0xff]  ;;  %v318_v9 = vld [vmem:[%s267_s13 + $0x18] sm:$0xff]  ;;  %v780_v22 = vmov 839922192   ;;  %s584_s20 = sshll.u32 %s837_s25, 3 }
  0x48   : > { %367 = vmatpush.msra.mxu0 %v321_v3  ;;  %v317_v8 = vld [vmem:[%s267_s13 + $0x10] sm:$0xff]  ;;  %341 = vperm.xlu0 %643, %v338_v7   ;;  %v315_v10 = vld [vmem:[%s267_s13] sm:$0xff]  ;;  %v316_v11 = vld [vmem:[%s267_s13 + $0x8] sm:$0xff]  ;;  %v332_v23 = vunpack.c.l.s4 %v780_v22  ;;  %s462_s11 = scalar_lea.hbm %s999_s6, %s584_s20  ;;  %s311_s29 = scalar_lea.vmem [#allocation7], %s569_s0 }
  0x49   : > { %387 = vmatpush.msra.mxu1 %v322_v4  ;;  %v337_v12 = vld [vmem:[%s995_s2] sm:$0xff]  ;;  %s464_s28 = sshll.u32 %s311_s29, 4  ;;  %s466_s13 = sshll.u32 %s462_s11, 4  ;;  %s465_s28 = int_to_ptr.vmem [resolvable:$true] %s464_s28  ;;  %s467_s13 = int_to_ptr.hbm [resolvable:$true] %s466_s13 }
  0x4a   : > { %368 = vmatpush.msra.mxu0 %v319_v5  ;;  %v326_v13 = vld [vmem:[%s998_s5] sm:$0xf]  ;;  %v333_v24 = vunpack.c.0.s8 %v332_v23  ;;  %s451_s25 = scalar_lea.sflag [#allocation4], %s924_s10  ;;  %s718_s23 = sshra.s32 %s467_s13, 4  ;;  %s719_s23 = int_to_ptr.hbm [resolvable:$true] %s718_s23 }
  0x4b   : > { %388 = vmatpush.msra.mxu1 %v320_v6  ;;  %v397_v21 = vld [vmem:[%s997_s4] sm:$0xf]  ;;  %s724_s7 = scalar_lea.hbm %s999_s6, 16  ;;  %p725_p3 = scmp.lt.s32.totalorder %s719_s23, %s999_s6 }
  0x4c   : > { %369 = vmatpush.msra.mxu0 %v317_v8  ;;  %v325_v27 = vld [vmem:[%s936_s27] sm:$0xff]  ;;  %s720_s27 = scalar_lea.hbm %s719_s23, 8 }
  0x4d   : > { %389 = vmatpush.msra.mxu1 %v318_v9  ;;  %p721_p6 = scmp.ne.s32.totalorder %s719_s23, %s720_s27  ;;  %p726_p4 = scmp.lt.s32.totalorder %s724_s7, %s720_s27 }
  0x4e   : > { %370 = vmatpush.msra.mxu0 %v315_v10 }
  0x4f   : > { %390 = vmatpush.msra.mxu1 %v316_v11  ;;  %572 = vmatmul.msk.f32.vlgmr.msra.gmra.mxu0 %vm344_vm1, %v337_v12  ;;  %p722_p13 = pnand %p721_p6, %p862_p11  ;;  %p727_p0 = por %p726_p4, %p725_p3 }
  0x50   : > { %574 = vmatmul.msk.f32.vlgmr.msra.gmra.mxu1 %vm344_vm1, %v337_v12  ;;  %329 = vperm.xlu0 %643, %v326_v13  }
  0x51   : > { %p723_p2 = pneg %p722_p13 }
  0x53   : > { %p728_p5 = pnand %p727_p0, %p723_p2 }
  0xba   : > { %v342_v14 = vpop.permute.xlu0 %341 }
  0xc2   : > { %v330_v25 = vpop.permute.xlu0 %329 }
  0xc3   : > { %v334_v26 = vperm.slane %v330_v25, %v333_v24 }
  0xc5   : > { %v336_v31 = vadd.f32 %v334_v26, %v325_v27 }
  0xcc   : > { %v372_v15 = vpop.f32.mrf.mxu0 }
  0xcd   : > { %v392_v16 = vpop.f32.mrf.mxu1  ;;  %v373_v17 = vadd.f32 %v372_v15, %v342_v14 }
  0xce   : > { %v393_v18 = vadd.f32 %v392_v16, %v342_v14 }
  0xcf   : > { %v395_v19 = vmax.f32 %v373_v17, 0.0 }
  0xd0   : > { %v396_v20 = vmax.f32 %v393_v18, 0.0 }
  0xd1   : > { %417 = vmatpush.msra.mxu2 %v395_v19 }
  0xd2   : > { %437 = vmatpush.msra.mxu3 %v396_v20  ;;  %575 = vmatmul.msk.f32.vlgmr.msra.gmra.mxu2 %vm398_vm2, %v397_v21 }
  0xd3   : > { %576 = vmatmul.msk.f32.vlgmr.msra.gmra.mxu3 %vm398_vm2, %v397_v21 }
 0x155   : > { %v419_v29 = vpop.f32.mrf.mxu2 }
 0x156   : > { %v439_v28 = vpop.f32.mrf.mxu3 }
 0x157   : > { %v444_v30 = vrot.slane %v439_v28, 4 }
 0x159   : > { %v445_v32 = vsel %vm348_vm0, %v419_v29, %v444_v30 }
 0x15a   : > { %v447_v33 = vadd.f32 %v445_v32, %v336_v31 }
 0x15c   : > { %v448_v34 = vmax.f32 %v447_v33, 0.0 }
 0x15e   : > { %449 = vst [vmem:[%s311_s29] sm:$0xff] %v448_v34 }
 0x15f   : > { %731 = shalt.err (!%p728_p5)
}
 0x160   : > { %591 = dma.vmem_to_hbm [thread:$0]  (%p862_p11), %s465_s28, 128, %s467_s13, %s451_s25  }
 0x161 PF: > { %s478_s10 = sand.u32 1, %s762_s21   ;;  %p601_p7 = pnand %p562_p9, %p866_p12 }
 0x162   : > { %s479_s12 = scalar_lea.sflag [#allocation4], %s478_s10 }
 0x163   : > { %p602_p8 = pneg %p601_p7 }
 0x165   : > { %757 = dma.done.wait (%p602_p8), %s479_s12, 128  }
 0x166   : > { %759 = vsyncadd (%p602_p8), %s479_s12, 4294967168  ;;  %s1013_s24 = sld [smem:[#allocation12_spill]]  ;;  %s1016_s21 = smov %s766_s22 }
 0x167   : > { %s1014_s30 = sld [smem:[#allocation11_spill]] }
 0x168   : > { %s1015_s23 = sld [smem:[#allocation13_spill]] }
 0x16c   : > { %p22_p10 = scmp.ge.s32.totalorder %s1013_s24, 4  }
 0x16d   : > { %s1017_s22 = smov %s1014_s30 }
 0x16e   :  { %24 = sbr.rel (!%p22_p10) target bundleno = 9 (0x9), region = 102 }
 0x173   :  { %485 = vsyncpa [#allocation3], 1 }
 0x174   :  { %487 = vsyncpa [#allocation3 + $0x1], 1 }
 0x175   :  { %488 = vsyncpa [#allocation6], 1 }
 0x176   :  { %490 = vsyncpa [#allocation6 + $0x1], 1 }
 0x177   :  { %491 = vsyncpa [#allocation4], 1 }
 0x178   :  { %493 = vsyncpa [#allocation4 + $0x1], 1 }

</bundles_post_ra>
